<compile_context>
chip_gen: v7x
topology: tpu7x:2x2x1
jax: 0.10.0
libtpu: 0.0.40
codegen_flags: <defaults>
</compile_context>

<pallas_src>
import jax
import jax.numpy as jnp
from jax import lax
from jax.experimental import pallas as pl
from jax.experimental.pallas import tpu as pltpu

_MIB = 1 << 20


def _detect_tpu():
    """Best-effort (tensorcores_per_chip, vmem_capacity_bytes).

    Conservative fallback (1 core, 64 MiB VMEM) if the query fails, so the
    derived tiling always fits the smallest-VMEM generation (v7x)."""
    cores = 1
    vmem_cap = 64 * _MIB
    try:
        info = pltpu.get_tpu_info()
        for name in ("tensor_cores_per_chip", "tensorcores_per_chip",
                     "num_tensorcores", "tensor_core_count"):
            v = getattr(info, name, None)
            if isinstance(v, int) and v >= 1:
                cores = min(int(v), 4)
                break
        v = getattr(info, "vmem_capacity_bytes", None)
        if isinstance(v, int) and v > 0:
            vmem_cap = int(v)
    except Exception:
        pass
    return cores, vmem_cap


def _make_rnmse_kernel(*, n_rows, n_cols, tile_rows, chunk_rows, acc_rows,
                       steps_per_core, needs_mask):
    n_chunks = tile_rows // chunk_rows
    direct = (chunk_rows == acc_rows)          # no sub-block folding needed
    sub = 1 if direct else chunk_rows // 8

    def kernel(y_ref, yhat_ref, acc_ref):
        i = pl.program_id(1)

        @pl.when(i == 0)
        def _init():
            acc_ref[...] = jnp.zeros(acc_ref.shape, acc_ref.dtype)

        # Logical (unclamped) tile index -> how many of its rows are real data.
        t = pl.program_id(0) * steps_per_core + i
        valid_rows = n_rows - t * tile_rows

        def body(b, carry):
            en, dn = carry
            off = pl.multiple_of(b * chunk_rows, chunk_rows)
            y = y_ref[pl.ds(off, chunk_rows), :].astype(jnp.float32)
            p = yhat_ref[pl.ds(off, chunk_rows), :].astype(jnp.float32)
            if needs_mask:
                # Rows past the end of the data (partial last tile or overshoot
                # tiles from the core split) hold garbage from the clamped DMA;
                # select them to zero so they contribute 0 to BOTH sums
                # (jnp.where keeps possible NaN garbage out of the result).
                row_ids = lax.broadcasted_iota(jnp.int32, (chunk_rows, n_cols), 0)
                keep = row_ids < (valid_rows - off)
                zero = jnp.zeros((), jnp.float32)
                y = jnp.where(keep, y, zero)
                p = jnp.where(keep, p, zero)
            d = y - p
            sq = d * d
            ysq = y * y
            if direct:
                en = en + sq
                dn = dn + ysq
            else:
                # Fold the chunk into vreg-shaped (8, n_cols) partials: pure
                # VALU adds, no cross-lane reduce, no full-tile temporaries.
                en = en + jnp.sum(sq.reshape(sub, 8, n_cols), axis=0)
                dn = dn + jnp.sum(ysq.reshape(sub, 8, n_cols), axis=0)
            return en, dn

        zeros = jnp.zeros((acc_rows, n_cols), jnp.float32)
        en, dn = lax.fori_loop(0, n_chunks, body, (zeros, zeros))
        acc_ref[0, 0, :, :] += en
        acc_ref[0, 1, :, :] += dn

    return kernel


def rnmse_loss(yhat: jax.Array, y: jax.Array) -> jax.Array:
    """Pallas equivalent of rNMSELoss.forward(yhat, y) -> scalar."""
    assert y.ndim == 2, "rNMSE expects 2-D [n_samples, prediction_dim] inputs"
    assert y.shape == yhat.shape

    cores, vmem_cap = _detect_tpu()
    # Leave headroom for compiler scratch: use at most ~5/8 of physical VMEM
    # (40 MiB on v7x's 64 MiB, 80 MiB on v5e/v6e's 128 MiB).
    usable_vmem = max(16 * _MIB, min(vmem_cap * 5 // 8, vmem_cap - 24 * _MIB))

    # Lane-dense re-layout only when it is a free reshape of the contiguous
    # buffer (the reduction is over all elements, so any regrouping is
    # equivalent).  Otherwise stream the original layout directly.
    n_rows, n_cols = y.shape
    total = y.size
    for w in (512, 256, 128):
        if total % w == 0:
            n_rows, n_cols = total // w, w
            break
    y2 = y.reshape(n_rows, n_cols)
    p2 = yhat.reshape(n_rows, n_cols)
    itemsize = y2.dtype.itemsize

    # --- tile / chunk selection ------------------------------------------
    # ~8 MiB per input block (2 inputs x 2 pipeline buffers = 32 MiB) unless
    # VMEM is tighter; the chunk bounds the in-kernel f32 temporaries.
    target_block = min(8 * _MIB, max(1 * _MIB, (usable_vmem - 6 * _MIB) // 4))
    if n_rows >= 8:
        desired = max(8, (target_block // (n_cols * itemsize)) // 8 * 8)
        tile_rows = min(desired, (n_rows // 8) * 8)
        if tile_rows > 128:
            tile_rows = (tile_rows // 128) * 128
            chunk_rows = 128
        else:
            chunk_rows = tile_rows
        acc_rows = 8
    else:
        tile_rows = chunk_rows = acc_rows = n_rows   # tiny input: one block

    n_tiles = -(-n_rows // tile_rows)

    # Core split only when there really is more than one TensorCore (v7x).
    num_core_splits = cores if (cores > 1 and n_tiles >= cores) else 1
    steps_per_core = -(-n_tiles // num_core_splits)
    needs_mask = num_core_splits * steps_per_core * tile_rows != n_rows

    if num_core_splits * steps_per_core > n_tiles:
        # Overshoot tiles from the split: clamp the DMA to the last in-bounds
        # block; the kernel masks their contribution to zero.
        in_map = lambda c, i: (jnp.minimum(c * steps_per_core + i, n_tiles - 1), 0)
    else:
        in_map = lambda c, i: (c * steps_per_core + i, 0)
    out_map = lambda c, i: (c, 0, 0, 0)

    # VMEM budget: 2 inputs x 2 pipeline buffers + chunk-sized f32 temporaries
    # + accumulators/slack; clamp to the per-generation usable cap.
    in_block_bytes = tile_rows * n_cols * itemsize
    chunk_f32_bytes = chunk_rows * n_cols * 4
    vmem_need = 4 * in_block_bytes + 8 * chunk_f32_bytes + 2 * _MIB
    vmem_limit = int(min(max(vmem_need, 16 * _MIB), usable_vmem))

    kernel = _make_rnmse_kernel(
        n_rows=n_rows, n_cols=n_cols, tile_rows=tile_rows,
        chunk_rows=chunk_rows, acc_rows=acc_rows,
        steps_per_core=steps_per_core, needs_mask=needs_mask)

    if num_core_splits > 1:
        dim_sem = (pltpu.CORE_PARALLEL, pltpu.ARBITRARY)
    else:
        dim_sem = ("arbitrary", "arbitrary")

    partials = pl.pallas_call(
        kernel,
        out_shape=jax.ShapeDtypeStruct(
            (num_core_splits, 2, acc_rows, n_cols), jnp.float32),
        grid_spec=pltpu.PrefetchScalarGridSpec(
            num_scalar_prefetch=0,
            grid=(num_core_splits, steps_per_core),
            in_specs=[
                pl.BlockSpec((tile_rows, n_cols), in_map),   # y (truth)
                pl.BlockSpec((tile_rows, n_cols), in_map),   # yhat (pred)
            ],
            out_specs=pl.BlockSpec((1, 2, acc_rows, n_cols), out_map),
        ),
        compiler_params=pltpu.CompilerParams(
            dimension_semantics=dim_sem,
            vmem_limit_bytes=vmem_limit,
        ),
    )(y2, p2)

    sums = jnp.sum(partials, axis=(0, 2, 3))   # -> [enum, denum]
    # TODO(synk): PyTorch raises if |denum| < 0.1; a data-dependent host
    # exception has no in-kernel equivalent, so that guard is omitted (callers
    # can check the denominator themselves if needed).
    return jnp.sqrt(sums[0] / sums[1])


def rnmse_ref(yhat, y):
    enum = jnp.sum((y - yhat) ** 2)
    denum = jnp.sum(y ** 2)
    return jnp.sqrt(enum / denum)


if __name__ == "__main__":
    key = jax.random.PRNGKey(0)
    k1, k2 = jax.random.split(key)

    # [n_samples x prediction_dimensionality], small shapes.
    n_samples, pred_dim = 32, 128
    y = jax.random.normal(k1, (n_samples, pred_dim), dtype=jnp.float32)
    yhat = y + 0.1 * jax.random.normal(k2, (n_samples, pred_dim), dtype=jnp.float32)

    out = jax.block_until_ready(rnmse_loss(yhat, y))
    ref = rnmse_ref(yhat, y)
    assert jnp.allclose(out, ref, rtol=1e-5, atol=1e-6), (out, ref)

    # Ragged shape: pred_dim not a multiple of 128 and rows not a multiple of
    # the tile -> exercises the in-kernel masking path (no wrapper-side pad).
    n2, d2 = 37, 96
    y_b = jax.random.normal(k1, (n2, d2), dtype=jnp.float32)
    yhat_b = y_b + 0.05 * jax.random.normal(k2, (n2, d2), dtype=jnp.float32)
    out_b = jax.block_until_ready(rnmse_loss(yhat_b, y_b))
    ref_b = rnmse_ref(yhat_b, y_b)
    assert jnp.allclose(out_b, ref_b, rtol=1e-5, atol=1e-6), (out_b, ref_b)

    print("KERNEL_OK")
</pallas_src>

<mosaic_0001>
module attributes {stable_mosaic.version = 11 : i64} {
  func.func @kernel(%arg0: i32, %arg1: i32, %arg2: memref<8x512xf32, #tpu.memory_space<vmem>>, %arg3: memref<8x512xf32, #tpu.memory_space<vmem>>, %arg4: memref<1x2x8x512xf32, #tpu.memory_space<vmem>>) attributes {dimension_semantics = [#tpu.dimension_semantics<arbitrary>, #tpu.dimension_semantics<arbitrary>], iteration_bounds = array<i64: 1, 1>, scalar_prefetch = 0 : i64, scratch_operands = 0 : i64, tpu.core_type = #tpu.core_type<tc>, window_params = [{transform_indices = @transform_0, window_bounds = array<i64: 8, 512>}, {transform_indices = @transform_1, window_bounds = array<i64: 8, 512>}, {transform_indices = @transform_2, window_bounds = array<i64: 1, 2, 8, 512>}]} {
    %c0_i32 = arith.constant 0 : i32
    %0 = arith.cmpi eq, %arg1, %c0_i32 : i32
    %1 = arith.extui %0 : i1 to i32
    %c0_i32_0 = arith.constant 0 : i32
    %2 = arith.cmpi ne, %1, %c0_i32_0 : i32
    scf.if %2 {
      %cst_18 = arith.constant 0.000000e+00 : f32
      %27 = vector.broadcast %cst_18 : f32 to vector<1x2x8x512xf32>
      %c0_19 = arith.constant 0 : index
      %c0_20 = arith.constant 0 : index
      %c0_21 = arith.constant 0 : index
      %c0_22 = arith.constant 0 : index
      %28 = vector.load %arg4[%c0_19, %c0_20, %c0_21, %c0_22] : memref<1x2x8x512xf32, #tpu.memory_space<vmem>>, vector<1x2x8x512xf32>
      tpu.vector_store %arg4[%c0_19, %c0_20, %c0_21, %c0_22], %27 {strides = array<i32>} : memref<1x2x8x512xf32, #tpu.memory_space<vmem>>, vector<1x2x8x512xf32>,
    } else {
    }
    %cst = arith.constant 0.000000e+00 : f32
    %3 = vector.broadcast %cst : f32 to vector<8x512xf32>
    %c0_i32_1 = arith.constant 0 : i32
    %c8_i32 = arith.constant 8 : i32
    %4 = arith.muli %c0_i32_1, %c8_i32 : i32
    %5 = tpu.assume_multiple %4, 8 : i32
    %6 = arith.index_cast %5 : i32 to index
    %c0 = arith.constant 0 : index
    %7 = vector.load %arg2[%6, %c0] : memref<8x512xf32, #tpu.memory_space<vmem>>, vector<8x512xf32>
    %8 = arith.index_cast %5 : i32 to index
    %c0_2 = arith.constant 0 : index
    %9 = vector.load %arg3[%8, %c0_2] : memref<8x512xf32, #tpu.memory_space<vmem>>, vector<8x512xf32>
    %10 = arith.subf %7, %9 : vector<8x512xf32>
    %11 = arith.mulf %10, %10 : vector<8x512xf32>
    %12 = arith.mulf %7, %7 : vector<8x512xf32>
    %13 = arith.addf %3, %11 : vector<8x512xf32>
    %14 = arith.addf %3, %12 : vector<8x512xf32>
    %c1_i32 = arith.constant 1 : i32
    %c0_3 = arith.constant 0 : index
    %c0_4 = arith.constant 0 : index
    %c0_5 = arith.constant 0 : index
    %c0_6 = arith.constant 0 : index
    %15 = vector.load %arg4[%c0_3, %c0_4, %c0_5, %c0_6] : memref<1x2x8x512xf32, #tpu.memory_space<vmem>>, vector<1x1x8x512xf32>
    %16 = vector.shape_cast %15 : vector<1x1x8x512xf32> to vector<8x512xf32>
    %17 = arith.addf %16, %13 : vector<8x512xf32>
    %c0_7 = arith.constant 0 : index
    %c0_8 = arith.constant 0 : index
    %c0_9 = arith.constant 0 : index
    %c0_10 = arith.constant 0 : index
    %18 = vector.load %arg4[%c0_7, %c0_8, %c0_9, %c0_10] : memref<1x2x8x512xf32, #tpu.memory_space<vmem>>, vector<1x1x8x512xf32>
    %19 = vector.shape_cast %18 : vector<1x1x8x512xf32> to vector<8x512xf32>
    %20 = vector.shape_cast %17 : vector<8x512xf32> to vector<1x1x8x512xf32>
    tpu.vector_store %arg4[%c0_7, %c0_8, %c0_9, %c0_10], %20 {strides = array<i32>} : memref<1x2x8x512xf32, #tpu.memory_space<vmem>>, vector<1x1x8x512xf32>,
    %c0_11 = arith.constant 0 : index
    %c1 = arith.constant 1 : index
    %c0_12 = arith.constant 0 : index
    %c0_13 = arith.constant 0 : index
    %21 = vector.load %arg4[%c0_11, %c1, %c0_12, %c0_13] : memref<1x2x8x512xf32, #tpu.memory_space<vmem>>, vector<1x1x8x512xf32>
    %22 = vector.shape_cast %21 : vector<1x1x8x512xf32> to vector<8x512xf32>
    %23 = arith.addf %22, %14 : vector<8x512xf32>
    %c0_14 = arith.constant 0 : index
    %c1_15 = arith.constant 1 : index
    %c0_16 = arith.constant 0 : index
    %c0_17 = arith.constant 0 : index
    %24 = vector.load %arg4[%c0_14, %c1_15, %c0_16, %c0_17] : memref<1x2x8x512xf32, #tpu.memory_space<vmem>>, vector<1x1x8x512xf32>
    %25 = vector.shape_cast %24 : vector<1x1x8x512xf32> to vector<8x512xf32>
    %26 = vector.shape_cast %23 : vector<8x512xf32> to vector<1x1x8x512xf32>
    tpu.vector_store %arg4[%c0_14, %c1_15, %c0_16, %c0_17], %26 {strides = array<i32>} : memref<1x2x8x512xf32, #tpu.memory_space<vmem>>, vector<1x1x8x512xf32>,
    return
  }
  func.func @transform_0(%arg0: i32, %arg1: i32) -> (i32, i32) {
    %c1_i32 = arith.constant 1 : i32
    %0 = arith.muli %arg0, %c1_i32 : i32
    %1 = arith.addi %0, %arg1 : i32
    %c0_i32 = arith.constant 0 : i32
    %c0_i32_0 = arith.constant 0 : i32
    return %1, %c0_i32 : i32, i32
  }
  func.func @transform_1(%arg0: i32, %arg1: i32) -> (i32, i32) {
    %c1_i32 = arith.constant 1 : i32
    %0 = arith.muli %arg0, %c1_i32 : i32
    %1 = arith.addi %0, %arg1 : i32
    %c0_i32 = arith.constant 0 : i32
    %c0_i32_0 = arith.constant 0 : i32
    return %1, %c0_i32 : i32, i32
  }
  func.func @transform_2(%arg0: i32, %arg1: i32) -> (i32, i32, i32, i32) {
    %c0_i32 = arith.constant 0 : i32
    %c0_i32_0 = arith.constant 0 : i32
    %c0_i32_1 = arith.constant 0 : i32
    %c0_i32_2 = arith.constant 0 : i32
    return %arg0, %c0_i32, %c0_i32_0, %c0_i32_1 : i32, i32, i32, i32
  }
}

</mosaic_0001>

<bundles_post_ra>
// kernel: tpu_custom_call.1
= control target key start
LH: loop header
LB: loop body
LE: loop exit
PB: predicated region body
PF: predicated region fallthrough
CT: control target
= control target key end

     0   :  { %7 = vsyncpa [#allocation3], 0  ;;  %s268_s0 = inlined_call_operand.hbm [shape: f32[8,512], index: 0, kind: input, shape index: {}]   ;;  %s269_s1 = inlined_call_operand.hbm [shape: f32[8,512], index: 1, kind: input, shape index: {}]   ;;  %s270_s2 = inlined_call_operand.hbm [shape: f32[1,2,8,512], index: 2, kind: output, shape index: {}]  }
   0x1   :  { %8 = vsyncpa [#allocation6], 0 }
   0x2   :  { %9 = vsyncpa [#allocation4], 0  ;;  %s212_s9 = smov [#allocation2]   ;;  %s213_s11 = smov [#allocation5]  }
   0x3   :  { %s20_s10 = sshll.u32 %s212_s9, 4  ;;  %s34_s12 = sshll.u32 %s213_s11, 4  ;;  %s21_s10 = int_to_ptr.vmem [resolvable:$true] %s20_s10  ;;  %s35_s12 = int_to_ptr.vmem [resolvable:$true] %s34_s12 }
   0x4   :  { %s140_s15 = scalar_lea.hbm %s268_s0, 512 }
   0x5   :  { %p141_p0 = scmp.ne.s32.totalorder %s268_s0, %s140_s15  ;;  %p144_p1 = scmp.lt.u32.totalorder %s140_s15, %s268_s0 }
   0x7   :  { %p146_p2 = pnand %p144_p1, %p141_p0 }
   0x9   :  { %149 = shalt.err (!%p146_p2)
}
   0xa   :  { %s150_s20 = scalar_lea.vmem %s21_s10, 512  ;;  %p155_p4 = scmp.lt.s32.totalorder %s21_s10, %s21_s10 }
   0xb   :  { %p151_p3 = scmp.ne.s32.totalorder %s21_s10, %s150_s20  ;;  %p156_p5 = scmp.lt.s32.totalorder %s150_s20, %s150_s20 }
   0xd   :  { %p157_p6 = por %p156_p5, %p155_p4 }
   0xf   :  { %p158_p7 = pnand %p157_p6, %p151_p3 }
  0x11   :  { %161 = shalt.err (!%p158_p7)
}
  0x12   :  { %23 = dma.hbm_to_vmem [thread:$0]  %s268_s0, 512, %s21_s10, [#allocation3]  }
  0x13   :  { %s162_s25 = scalar_lea.hbm %s269_s1, 512 }
  0x14   :  { %p163_p8 = scmp.ne.s32.totalorder %s269_s1, %s162_s25  ;;  %p166_p9 = scmp.lt.u32.totalorder %s162_s25, %s269_s1 }
  0x16   :  { %p168_p10 = pnand %p166_p9, %p163_p8 }
  0x18   :  { %171 = shalt.err (!%p168_p10)
}
  0x19   :  { %s172_s30 = scalar_lea.vmem %s35_s12, 512  ;;  %p177_p12 = scmp.lt.s32.totalorder %s35_s12, %s35_s12 }
  0x1a   :  { %p173_p11 = scmp.ne.s32.totalorder %s35_s12, %s172_s30  ;;  %p178_p13 = scmp.lt.s32.totalorder %s172_s30, %s172_s30 }
  0x1c   :  { %p179_p0 = por %p178_p13, %p177_p12 }
  0x1e   :  { %p180_p1 = pnand %p179_p0, %p173_p11 }
  0x20   :  { %183 = shalt.err (!%p180_p1)
}
  0x21   :  { %37 = dma.hbm_to_vmem [thread:$0]  %s269_s1, 512, %s35_s12, [#allocation6]  }
  0x22   :  { %206 = dma.done.wait [#allocation3], 512  }
  0x23   :  { %207 = vsyncadd [#allocation3], 4294966784 }
  0x24   :  { %208 = dma.done.wait [#allocation6], 512  }
  0x25   :  { %209 = vsyncadd [#allocation6], 4294966784  ;;  %v61_v0 = vld [vmem:[#allocation2] sm:$0xff]  ;;  %v62_v2 = vld [vmem:[#allocation2 + $0x8] sm:$0xff]  ;;  %s214_s1 = smov [#allocation7]  }
  0x26   :  { %v67_v1 = vld [vmem:[#allocation5] sm:$0xff]  ;;  %v68_v4 = vld [vmem:[#allocation5 + $0x8] sm:$0xff]  ;;  %v63_v5 = vld [vmem:[#allocation2 + $0x10] sm:$0xff]  ;;  %v79_v7 = vmul.f32 %v61_v0, %v61_v0  ;;  %v80_v8 = vmul.f32 %v62_v2, %v62_v2  ;;  %s121_s4 = sshll.u32 %s214_s1, 4  ;;  %s122_s4 = int_to_ptr.vmem [resolvable:$true] %s121_s4 }
  0x27   :  { %v71_v3 = vsub.f32 %v61_v0, %v67_v1  ;;  %v69_v6 = vld [vmem:[#allocation5 + $0x10] sm:$0xff]  ;;  %v72_v9 = vsub.f32 %v62_v2, %v68_v4  ;;  %v64_v11 = vld [vmem:[#allocation2 + $0x18] sm:$0xff]  ;;  %v81_v13 = vmul.f32 %v63_v5, %v63_v5  ;;  %s184_s5 = scalar_lea.vmem %s122_s4, 1024  ;;  %p189_p3 = scmp.lt.s32.totalorder %s122_s4, %s122_s4 }
  0x28   :  { %v73_v10 = vsub.f32 %v63_v5, %v69_v6  ;;  %v70_v12 = vld [vmem:[#allocation5 + $0x18] sm:$0xff]  ;;  %v82_v18 = vmul.f32 %v64_v11, %v64_v11  ;;  %112 = vst [vmem:[#allocation7 + $0x20] sm:$0xff] %v79_v7  ;;  %113 = vst [vmem:[#allocation7 + $0x28] sm:$0xff] %v80_v8  ;;  %p185_p2 = scmp.ne.s32.totalorder %s122_s4, %s184_s5  ;;  %p190_p4 = scmp.lt.s32.totalorder %s184_s5, %s184_s5 }
  0x29   :  { %v75_v14 = vmul.f32 %v71_v3, %v71_v3  ;;  %v74_v15 = vsub.f32 %v64_v11, %v70_v12  ;;  %v76_v16 = vmul.f32 %v72_v9, %v72_v9  ;;  %114 = vst [vmem:[#allocation7 + $0x30] sm:$0xff] %v81_v13 }
  0x2a   :  { %v77_v17 = vmul.f32 %v73_v10, %v73_v10  ;;  %115 = vst [vmem:[#allocation7 + $0x38] sm:$0xff] %v82_v18  ;;  %p191_p5 = por %p190_p4, %p189_p3 }
  0x2b   :  { %v78_v19 = vmul.f32 %v74_v15, %v74_v15  ;;  %99 = vst [vmem:[#allocation7] sm:$0xff] %v75_v14  ;;  %100 = vst [vmem:[#allocation7 + $0x8] sm:$0xff] %v76_v16 }
  0x2c   :  { %101 = vst [vmem:[#allocation7 + $0x10] sm:$0xff] %v77_v17  ;;  %p192_p6 = pnand %p191_p5, %p185_p2 }
  0x2d   :  { %102 = vst [vmem:[#allocation7 + $0x18] sm:$0xff] %v78_v19 }
  0x2e   :  { %195 = shalt.err (!%p192_p6)
}
  0x2f   :  { %s196_s8 = scalar_lea.hbm %s270_s2, 1024 }
  0x30   :  { %p197_p7 = scmp.ne.s32.totalorder %s270_s2, %s196_s8  ;;  %p200_p8 = scmp.lt.u32.totalorder %s196_s8, %s270_s2 }
  0x32   :  { %p202_p9 = pnand %p200_p8, %p197_p7 }
  0x34   :  { %205 = shalt.err (!%p202_p9)
}
  0x35   :  { %s215_s13 = smov 512   ;;  %s216_s14 = smov 32  }
  0x36   :  { %127 = dma.vmem_to_hbm [thread:$0]  %s122_s4, 1024, %s270_s2, [#allocation4], %s215_s13, %s215_s13, %s216_s14  }
  0x37   :  { %210 = dma.done.wait [#allocation4], 1024  }
  0x38   :  { %211 = vsyncadd [#allocation4], 4294966272 }
  0x39   :  { %131 = vsyncpa [#allocation3], 1 }
  0x3a   :  { %132 = vsyncpa [#allocation6], 1 }
  0x3b   :  { %133 = vsyncpa [#allocation4], 1 }

</bundles_post_ra>
